<compile_context>
chip_gen: v6e
topology: v6e:2x2x1
jax: 0.10.0
libtpu: 0.0.40
codegen_flags: <defaults>
</compile_context>

<pallas_src>
import math
import jax
import jax.numpy as jnp
from jax.experimental import pallas as pl
from jax.experimental.pallas import tpu as pltpu


def _round_up(x, m):
    return (x + m - 1) // m * m


def _ae_kernel(x_ref, we_ref, be_ref, wd_ref, bd_ref, enc_ref, dec_ref):
    """One batch tile: encoder matmul + bias, decoder matmul + bias (MXU, f32 acc)."""
    x = x_ref[...]
    enc_f32 = jnp.dot(x, we_ref[...], preferred_element_type=jnp.float32) + be_ref[...]
    enc_ref[...] = enc_f32.astype(enc_ref.dtype)
    # Decoder consumes the encoder activation in the layer's activation dtype,
    # matching PyTorch where `encoded` is materialized in x.dtype before decoder Linear.
    dec_f32 = jnp.dot(enc_f32.astype(x.dtype), wd_ref[...],
                      preferred_element_type=jnp.float32) + bd_ref[...]
    dec_ref[...] = dec_f32.astype(dec_ref.dtype)


def autoencoder_layer_forward(x, w_enc, b_enc, w_dec, b_dec,
                              *, self_training=True, batch_tile=None,
                              vmem_budget_bytes=40 * 1024 * 1024):
    """Pallas forward for AutoEncoderLayer.

    Args:
      x:      (N, in_features)
      w_enc:  (out_features, in_features)   -- PyTorch Linear weight layout
      b_enc:  (out_features,)
      w_dec:  (in_features, out_features)
      b_dec:  (in_features,)
    Returns:
      (decoded, encoded) if self_training else encoded
    """
    n, d_in = x.shape
    d_out, d_in_w = w_enc.shape
    assert d_in_w == d_in, "w_enc must be (out_features, in_features)"
    dtype = x.dtype
    itemsize = jnp.dtype(dtype).itemsize
    f32 = jnp.float32

    # Lane-dense padded feature dims (multiples of 128): unmasked stores, full MXU width.
    d_in_p = _round_up(d_in, 128)
    d_out_p = _round_up(d_out, 128)

    # Sublane alignment: 8 rows for 32-bit dtypes, 16 for 16-bit packed dtypes (bf16).
    align = 8 if itemsize >= 4 else 16

    if batch_tile is None:
        # VMEM budget: weights/biases resident once, x/enc/dec double-buffered tiles.
        fixed = 2 * (2 * d_in_p * d_out_p * itemsize + 4 * (d_in_p + d_out_p))
        per_row = 2 * (2 * d_in_p + d_out_p) * itemsize
        avail = max(vmem_budget_bytes - fixed, per_row * align)
        bt = min(avail // per_row, 512, _round_up(n, align))
        batch_tile = max(align, (bt // align) * align)
        # Prefer >=2 grid steps when the batch allows it (v7x: 2 TensorCores/chip).
        if _round_up(n, align) // batch_tile < 2 and n >= 2 * align:
            batch_tile = max(align, _round_up(pl.cdiv(n, 2), align))
    else:
        batch_tile = max(align, _round_up(batch_tile, align))

    n_p = _round_up(n, batch_tile)
    grid = (n_p // batch_tile,)

    # Glue: zero-pad inputs/weights/biases (exact math), pre-transpose weights so the
    # kernel matmuls are plain (M,K)x(K,N), keep biases in f32 for the post-acc add.
    x_p = jnp.zeros((n_p, d_in_p), dtype).at[:n, :d_in].set(x)
    we_t = jnp.zeros((d_in_p, d_out_p), dtype).at[:d_in, :d_out].set(w_enc.T.astype(dtype))
    wd_t = jnp.zeros((d_out_p, d_in_p), dtype).at[:d_out, :d_in].set(w_dec.T.astype(dtype))
    be2 = jnp.zeros((1, d_out_p), f32).at[0, :d_out].set(b_enc.astype(f32))
    bd2 = jnp.zeros((1, d_in_p), f32).at[0, :d_in].set(b_dec.astype(f32))

    # VMEM footprint (weights conservatively counted double-buffered) + headroom.
    weights_bytes = 2 * d_in_p * d_out_p * itemsize + 4 * (d_in_p + d_out_p)
    io_bytes = 2 * batch_tile * (2 * d_in_p + d_out_p) * itemsize
    vmem_limit = int(min(max(2 * weights_bytes + io_bytes + (4 << 20), 16 << 20), 100 << 20))

    flops = 4 * n_p * d_in_p * d_out_p  # encode + decode matmuls (2 flops/MAC each)
    bytes_accessed = (itemsize * (n_p * (2 * d_in_p + d_out_p) + 2 * d_in_p * d_out_p)
                      + 4 * (d_in_p + d_out_p))
    cost = pl.CostEstimate(flops=flops, transcendentals=0,
                           bytes_accessed=bytes_accessed)

    enc_p, dec_p = pl.pallas_call(
        _ae_kernel,
        out_shape=(
            jax.ShapeDtypeStruct((n_p, d_out_p), dtype),   # encoded (padded)
            jax.ShapeDtypeStruct((n_p, d_in_p), dtype),    # decoded (padded)
        ),
        grid_spec=pltpu.PrefetchScalarGridSpec(
            num_scalar_prefetch=0,
            grid=grid,
            in_specs=[
                pl.BlockSpec((batch_tile, d_in_p), lambda i: (i, 0)),   # x tile
                pl.BlockSpec((d_in_p, d_out_p), lambda i: (0, 0)),      # W_enc^T (invariant)
                pl.BlockSpec((1, d_out_p), lambda i: (0, 0)),           # b_enc   (invariant)
                pl.BlockSpec((d_out_p, d_in_p), lambda i: (0, 0)),      # W_dec^T (invariant)
                pl.BlockSpec((1, d_in_p), lambda i: (0, 0)),            # b_dec   (invariant)
            ],
            out_specs=[
                pl.BlockSpec((batch_tile, d_out_p), lambda i: (i, 0)),
                pl.BlockSpec((batch_tile, d_in_p), lambda i: (i, 0)),
            ],
        ),
        compiler_params=pltpu.CompilerParams(
            dimension_semantics=("parallel",),
            vmem_limit_bytes=vmem_limit),
        cost_estimate=cost,
    )(x_p, we_t, be2, wd_t, bd2)

    encoded = enc_p[:n, :d_out]
    decoded = dec_p[:n, :d_in]
    if self_training:
        return decoded, encoded
    return encoded


def _init_linear_params(key, in_features, out_features, dtype=jnp.float32):
    # Deterministic init mimicking PyTorch nn.Linear default (uniform +-1/sqrt(fan_in)).
    k_w, k_b = jax.random.split(key)
    bound = 1.0 / math.sqrt(in_features)
    w = jax.random.uniform(k_w, (out_features, in_features), dtype,
                           minval=-bound, maxval=bound)
    b = jax.random.uniform(k_b, (out_features,), dtype,
                           minval=-bound, maxval=bound)
    return w, b


if __name__ == "__main__":
    key = jax.random.PRNGKey(0)
    k_x, k_enc, k_dec = jax.random.split(key, 3)

    batch = 16
    input_dim = 32
    output_dim = 16

    x = jax.random.normal(k_x, (batch, input_dim), jnp.float32)
    w_enc, b_enc = _init_linear_params(k_enc, input_dim, output_dim)
    w_dec, b_dec = _init_linear_params(k_dec, output_dim, input_dim)

    decoded, encoded = autoencoder_layer_forward(
        x, w_enc, b_enc, w_dec, b_dec, self_training=True)
    jax.block_until_ready((decoded, encoded))

    # Reference check in plain JAX (same semantics as the PyTorch forward).
    enc_ref = x @ w_enc.T + b_enc
    dec_ref = enc_ref @ w_dec.T + b_dec
    assert encoded.shape == (batch, output_dim) and decoded.shape == (batch, input_dim)
    assert jnp.allclose(encoded, enc_ref, atol=1e-5, rtol=1e-5)
    assert jnp.allclose(decoded, dec_ref, atol=1e-5, rtol=1e-5)

    # Also exercise the SelfTraining=False branch (returns encoded only).
    enc_only = autoencoder_layer_forward(
        x, w_enc, b_enc, w_dec, b_dec, self_training=False)
    jax.block_until_ready(enc_only)
    assert jnp.allclose(enc_only, enc_ref, atol=1e-5, rtol=1e-5)

    # Uneven batch (remainder handling via padding, no divisibility assert).
    x_odd = x[:11]
    dec_odd, enc_odd = autoencoder_layer_forward(
        x_odd, w_enc, b_enc, w_dec, b_dec, self_training=True)
    jax.block_until_ready((dec_odd, enc_odd))
    assert jnp.allclose(enc_odd, enc_ref[:11], atol=1e-5, rtol=1e-5)
    assert jnp.allclose(dec_odd, dec_ref[:11], atol=1e-5, rtol=1e-5)

    print("KERNEL_OK")
</pallas_src>

<mosaic_0001>
module attributes {stable_mosaic.version = 11 : i64} {
  func.func @_ae_kernel(%arg0: i32, %arg1: memref<8x128xf32, #tpu.memory_space<vmem>>, %arg2: memref<128x128xf32, #tpu.memory_space<vmem>>, %arg3: memref<1x128xf32, #tpu.memory_space<vmem>>, %arg4: memref<128x128xf32, #tpu.memory_space<vmem>>, %arg5: memref<1x128xf32, #tpu.memory_space<vmem>>, %arg6: memref<8x128xf32, #tpu.memory_space<vmem>>, %arg7: memref<8x128xf32, #tpu.memory_space<vmem>>) attributes {dimension_semantics = [#tpu.dimension_semantics<parallel>], iteration_bounds = array<i64: 2>, scalar_prefetch = 0 : i64, scratch_operands = 0 : i64, tpu.core_type = #tpu.core_type<tc>, window_params = [{transform_indices = @transform_0, window_bounds = array<i64: 8, 128>}, {pipeline_mode = #tpu.pipeline_mode<synchronous>, transform_indices = @transform_1, window_bounds = array<i64: 128, 128>}, {pipeline_mode = #tpu.pipeline_mode<synchronous>, transform_indices = @transform_2, window_bounds = array<i64: 1, 128>}, {pipeline_mode = #tpu.pipeline_mode<synchronous>, transform_indices = @transform_3, window_bounds = array<i64: 128, 128>}, {pipeline_mode = #tpu.pipeline_mode<synchronous>, transform_indices = @transform_4, window_bounds = array<i64: 1, 128>}, {transform_indices = @transform_5, window_bounds = array<i64: 8, 128>}, {transform_indices = @transform_6, window_bounds = array<i64: 8, 128>}]} {
    %c0 = arith.constant 0 : index
    %c0_0 = arith.constant 0 : index
    %0 = vector.load %arg1[%c0, %c0_0] : memref<8x128xf32, #tpu.memory_space<vmem>>, vector<8x128xf32>
    %c0_1 = arith.constant 0 : index
    %c0_2 = arith.constant 0 : index
    %1 = vector.load %arg2[%c0_1, %c0_2] : memref<128x128xf32, #tpu.memory_space<vmem>>, vector<128x128xf32>
    %cst = arith.constant dense<0.000000e+00> : vector<8x128xf32>
    %2 = tpu.matmul %0, %1, %cst {dimension_numbers = #tpu.dot_dimension_numbers<[1], [0], [0], [1], [0, 0, 1, 1], [], []>} : vector<8x128xf32>, vector<128x128xf32>, vector<8x128xf32> -> vector<8x128xf32>
    %c0_3 = arith.constant 0 : index
    %c0_4 = arith.constant 0 : index
    %3 = vector.load %arg3[%c0_3, %c0_4] : memref<1x128xf32, #tpu.memory_space<vmem>>, vector<1x128xf32>
    %4 = vector.broadcast %3 : vector<1x128xf32> to vector<8x128xf32>
    %5 = arith.addf %2, %4 : vector<8x128xf32>
    %c0_5 = arith.constant 0 : index
    %c0_6 = arith.constant 0 : index
    %6 = vector.load %arg6[%c0_5, %c0_6] : memref<8x128xf32, #tpu.memory_space<vmem>>, vector<8x128xf32>
    tpu.vector_store %arg6[%c0_5, %c0_6], %5 {strides = array<i32>} : memref<8x128xf32, #tpu.memory_space<vmem>>, vector<8x128xf32>,
    %c0_7 = arith.constant 0 : index
    %c0_8 = arith.constant 0 : index
    %7 = vector.load %arg4[%c0_7, %c0_8] : memref<128x128xf32, #tpu.memory_space<vmem>>, vector<128x128xf32>
    %cst_9 = arith.constant dense<0.000000e+00> : vector<8x128xf32>
    %8 = tpu.matmul %5, %7, %cst_9 {dimension_numbers = #tpu.dot_dimension_numbers<[1], [0], [0], [1], [0, 0, 1, 1], [], []>} : vector<8x128xf32>, vector<128x128xf32>, vector<8x128xf32> -> vector<8x128xf32>
    %c0_10 = arith.constant 0 : index
    %c0_11 = arith.constant 0 : index
    %9 = vector.load %arg5[%c0_10, %c0_11] : memref<1x128xf32, #tpu.memory_space<vmem>>, vector<1x128xf32>
    %10 = vector.broadcast %9 : vector<1x128xf32> to vector<8x128xf32>
    %11 = arith.addf %8, %10 : vector<8x128xf32>
    %c0_12 = arith.constant 0 : index
    %c0_13 = arith.constant 0 : index
    %12 = vector.load %arg7[%c0_12, %c0_13] : memref<8x128xf32, #tpu.memory_space<vmem>>, vector<8x128xf32>
    tpu.vector_store %arg7[%c0_12, %c0_13], %11 {strides = array<i32>} : memref<8x128xf32, #tpu.memory_space<vmem>>, vector<8x128xf32>,
    return
  }
  func.func @transform_0(%arg0: i32) -> (i32, i32) {
    %c0_i32 = arith.constant 0 : i32
    %c0_i32_0 = arith.constant 0 : i32
    return %arg0, %c0_i32 : i32, i32
  }
  func.func @transform_1(%arg0: i32) -> (i32, i32) {
    %c0_i32 = arith.constant 0 : i32
    %c0_i32_0 = arith.constant 0 : i32
    %c0_i32_1 = arith.constant 0 : i32
    return %c0_i32, %c0_i32_0 : i32, i32
  }
  func.func @transform_2(%arg0: i32) -> (i32, i32) {
    %c0_i32 = arith.constant 0 : i32
    %c0_i32_0 = arith.constant 0 : i32
    %c0_i32_1 = arith.constant 0 : i32
    return %c0_i32, %c0_i32_0 : i32, i32
  }
  func.func @transform_3(%arg0: i32) -> (i32, i32) {
    %c0_i32 = arith.constant 0 : i32
    %c0_i32_0 = arith.constant 0 : i32
    %c0_i32_1 = arith.constant 0 : i32
    return %c0_i32, %c0_i32_0 : i32, i32
  }
  func.func @transform_4(%arg0: i32) -> (i32, i32) {
    %c0_i32 = arith.constant 0 : i32
    %c0_i32_0 = arith.constant 0 : i32
    %c0_i32_1 = arith.constant 0 : i32
    return %c0_i32, %c0_i32_0 : i32, i32
  }
  func.func @transform_5(%arg0: i32) -> (i32, i32) {
    %c0_i32 = arith.constant 0 : i32
    %c0_i32_0 = arith.constant 0 : i32
    return %arg0, %c0_i32 : i32, i32
  }
  func.func @transform_6(%arg0: i32) -> (i32, i32) {
    %c0_i32 = arith.constant 0 : i32
    %c0_i32_0 = arith.constant 0 : i32
    return %arg0, %c0_i32 : i32, i32
  }
}

</mosaic_0001>

<bundles_post_ra>
// kernel: tpu_custom_call.1
= control target key start
LH: loop header
LB: loop body
LE: loop exit
PB: predicated region body
PF: predicated region fallthrough
CT: control target
= control target key end

     0   :  { %s1312_s0 = inlined_call_operand.hbm [shape: f32[16,128], index: 0, kind: input, shape index: {}]   ;;  %s1313_s1 = inlined_call_operand.hbm [shape: f32[128,128], index: 1, kind: input, shape index: {}]   ;;  %s1314_s2 = inlined_call_operand.vmem [shape: f32[1,128], index: 2, kind: input, shape index: {}]   ;;  %s1315_s3 = inlined_call_operand.hbm [shape: f32[128,128], index: 3, kind: input, shape index: {}]   ;;  %s1316_s4 = inlined_call_operand.vmem [shape: f32[1,128], index: 4, kind: input, shape index: {}]   ;;  %s1317_s5 = inlined_call_operand.hbm [shape: f32[16,128], index: 5, kind: output, shape index: {0}]   ;;  %s1318_s6 = inlined_call_operand.hbm [shape: f32[16,128], index: 6, kind: output, shape index: {1}]  }
   0x1   :  { %1323 = sst [smem:[#allocation15_spill]] %s1313_s1 }
   0x2   :  { %12 = vsyncpa [#allocation3], 0 }
   0x3   :  { %14 = vsyncpa [#allocation3 + $0x1], 0 }
   0x4   :  { %15 = vsyncpa [#allocation6], 0 }
   0x5   :  { %16 = vsyncpa [#allocation4], 0 }
   0x6   :  { %18 = vsyncpa [#allocation4 + $0x1], 0 }
   0x7   :  { %19 = vsyncpa [#allocation10], 0 }
   0x8   :  { %21 = vsyncpa [#allocation10 + $0x1], 0  ;;  %s1074_s21 = smov 0   ;;  %s1076_s22 = smov 0  }
   0x9   :  { %s1078_s23 = smov 0   ;;  %s1080_s24 = smov 0  }
   0xa LB: > { %s1095_s25 = sadd.s32 4294967295, %s1028_s24   ;;  %s649_s26 = sadd.s32 4294967294, %s1028_s24   ;;  %s1028_s24 = sphi %s1080_s24, %s1342_s24   ;;  %s1024_s23 = sphi %s1078_s23, %s1341_s23   ;;  %s1020_s22 = sphi %s1076_s22, %s1340_s22   ;;  %s1016_s21 = sphi %s1074_s21, %s1339_s21  }
   0xb   : > { %p47_p0 = scmp.ne.s32.totalorder %s1020_s22, %s1016_s21  ;;  %p1319_p1 = scmp.eq.s32.totalorder %s1095_s25, 0 }
   0xc   : > { %p161_p3 = scmp.eq.s32.totalorder %s649_s26, 1  ;;  %p650_p5 = scmp.ge.s32.totalorder %s1028_s24, 1 }
   0xd   : > { %p1104_p4 = por %p1319_p1, %p47_p0  ;;  %p194_p7 = scmp.lt.s32.totalorder %s1028_s24, 3 }
   0xe   : > { %p1109_p6 = por %p161_p3, %p47_p0  ;;  %s1030_s30 = smov [#allocation5]  }
   0xf   : > { %s1324_s27 = scalar_select %p1104_p4, 1, 0 }
  0x10   : > { %s1325_s28 = scalar_select %p1109_p6, 1, 0 }
  0x11   : > { %p1114_p8 = pnand %p650_p5, %p194_p7  ;;  %s206_s7 = sshll.u32 %s1030_s30, 4  ;;  %s207_s7 = int_to_ptr.vmem [resolvable:$true] %s206_s7 }
  0x12   : > { %s1031_s9 = smov [#allocation7]   ;;  %s861_s11 = scalar_lea.vmem %s207_s7, 2048 }
  0x13   : > { %s1326_s29 = scalar_select %p1114_p8, 1, 0 }
  0x14   : > { %p788_p9 = pneg %p1114_p8  ;;  %s222_s10 = sshll.u32 %s1031_s9, 4  ;;  %s223_s10 = int_to_ptr.vmem [resolvable:$true] %s222_s10 }
  0x15   : > { %p862_p13 = scmp.ne.s32.totalorder %s207_s7, %s861_s11  ;;  %p869_p5 = scmp.lt.s32.totalorder %s207_s7, %s207_s7 }
  0x16   : > { %p1123_p11 = pnand %p788_p9, %p1319_p1  ;;  %p870_p7 = scmp.lt.s32.totalorder %s861_s11, %s861_s11 }
  0x18   : > { %p852_p12 = pneg %p1123_p11  ;;  %p871_p10 = por %p870_p7, %p869_p5 }
  0x1a   : > { %p864_p0 = pnand %p862_p13, %p852_p12 }
  0x1c   : > { %p865_p3 = pneg %p864_p0 }
  0x1e   : > { %p872_p9 = pnand %p871_p10, %p865_p3 }
  0x20   : > { %875 = shalt.err (!%p872_p9)
}
  0x21   : > { %s1032_s12 = smov 128   ;;  %s1033_s13 = smov 8  }
  0x22   : > { %s1328_s1 = sld [smem:[#allocation15_spill]]  ;;  %s887_s16 = scalar_lea.vmem %s223_s10, 2048 }
  0x23   : > { %p888_p1 = scmp.ne.s32.totalorder %s223_s10, %s887_s16  ;;  %p895_p2 = scmp.lt.s32.totalorder %s223_s10, %s223_s10 }
  0x24   : > { %p896_p6 = scmp.lt.s32.totalorder %s887_s16, %s887_s16 }
  0x25   : > { %p890_p13 = pnand %p888_p1, %p852_p12 }
  0x26   : > { %p897_p5 = por %p896_p6, %p895_p2 }
  0x27   : > { %p891_p0 = pneg %p890_p13 }
  0x28   : > { %791 = dma.hbm_to_vmem [thread:$0]  (!%p1123_p11), %s1328_s1, 2048, %s207_s7, [#allocation6], %s1032_s12, %s1032_s12, %s1033_s13  }
  0x29   : > { %p898_p10 = pnand %p897_p5, %p891_p0 }
  0x2b   : > { %901 = shalt.err (!%p898_p10)
}
  0x2c   : > { %794 = dma.hbm_to_vmem [thread:$0]  (!%p1123_p11), %s1315_s3, 2048, %s223_s10, [#allocation6], %s1032_s12, %s1032_s12, %s1033_s13  }
  0x2d   : > { %s1146_s19 = sadd.s32 1, %s1028_s24   ;;  %s34_s20 = sadd.s32 1, %s1024_s23 }
  0x2e   : > { %s31_s26 = ssub.s32 %s1028_s24, %s1146_s19  ;;  %p41_p1 = scmp.ne.s32.totalorder %s1024_s23, %s1020_s22 }
  0x2f   : > { %p32_p2 = scmp.eq.s32.totalorder %s31_s26, 0  ;;  %p42_p6 = scmp.eq.s32.totalorder %s1028_s24, 0 }
  0x30   : > { %p1329_p12 = scmp.eq.s32.totalorder %s1095_s25, 1  ;;  %p808_p7 = scmp.lt.s32.totalorder %s1028_s24, 2 }
  0x31   : > { %s1162_s7 = scalar_select %p32_p2, %s1024_s23, %s34_s20  }
  0x32   : > { %p1156_p3 = por %p1329_p12, %p41_p1  ;;  %p43_p9 = por %p42_p6, %p41_p1 }
  0x33   : > { %s239_s8 = sand.u32 1, %s1024_s23   ;;  %s655_s10 = sshll.u32 %s1028_s24, 7 }
  0x34   : > { %s1330_s30 = scalar_select %p1156_p3, 1, 0 }
  0x35   : > { %s654_s9 = sshll.u32 %s239_s8, 3  ;;  %s1169_s13 = scalar_lea.hbm %s1312_s0, %s655_s10 }
  0x36   : > { %s243_s14 = scalar_lea.vmem [#allocation2], %s654_s9  ;;  %p1171_p11 = pnand %p808_p7, %p43_p9 }
  0x37   : > { %s250_s15 = sshll.u32 %s243_s14, 4  ;;  %s240_s17 = scalar_lea.sflag [#allocation3], %s239_s8  ;;  %s251_s15 = int_to_ptr.vmem [resolvable:$true] %s250_s15 }
  0x38   : > { %s902_s18 = scalar_lea.hbm %s1169_s13, 128  ;;  %p904_p0 = pneg %p1171_p11 }
  0x39   : > { %p903_p13 = scmp.ne.s32.totalorder %s1169_s13, %s902_s18  ;;  %s907_s10 = scalar_lea.hbm %s1312_s0, 256 }
  0x3a   : > { %p908_p1 = scmp.lt.s32.totalorder %s1169_s13, %s1312_s0  ;;  %p909_p2 = scmp.lt.s32.totalorder %s907_s10, %s902_s18 }
  0x3b   : > { %p905_p5 = pnand %p904_p0, %p903_p13 }
  0x3c   : > { %p910_p6 = por %p909_p2, %p908_p1 }
  0x3d   : > { %p906_p10 = pneg %p905_p5 }
  0x3f   : > { %p911_p12 = pnand %p910_p6, %p906_p10 }
  0x41   : > { %914 = shalt.err (!%p911_p12)
}
  0x42   : > { %s915_s12 = scalar_lea.vmem %s251_s15, 128  ;;  %s1034_s8 = smov [#allocation2]  }
  0x43   : > { %p916_p7 = scmp.ne.s32.totalorder %s251_s15, %s915_s12  ;;  %s920_s14 = sshll.u32 %s1034_s8, 4  ;;  %s921_s14 = int_to_ptr.vmem [resolvable:$false] %s920_s14 }
  0x44   : > { %s922_s1 = scalar_lea.vmem %s921_s14, 256  ;;  %p923_p13 = scmp.lt.s32.totalorder %s251_s15, %s921_s14 }
  0x45   : > { %p918_p9 = pnand %p916_p7, %p904_p0  ;;  %p924_p5 = scmp.lt.s32.totalorder %s922_s1, %s915_s12 }
  0x47   : > { %p919_p3 = pneg %p918_p9  ;;  %p925_p4 = por %p924_p5, %p923_p13 }
  0x49   : > { %p926_p8 = pnand %p925_p4, %p919_p3 }
  0x4b   : > { %929 = shalt.err (!%p926_p8)
}
  0x4c   : > { %798 = dma.hbm_to_vmem [thread:$0]  (!%p1171_p11), %s1169_s13, 128, %s251_s15, %s240_s17  }
  0x4d   : > { %p1332_p10 = scmp.ne.s32.totalorder %s1326_s29, 0 }
  0x4e   : > { %s1192_s18 = sand.u32 (!%p1332_p10), 1, %s1020_s22   ;;  %p1333_p4 = scmp.ne.s32.totalorder (!%p1332_p10), %s1324_s27, 0 }
  0x4f   : > { %259 = sbr.rel (%p1332_p10) target bundleno = 525 (0x20d), region = 40  ;;  %s1195_s20 = sshll.u32 (!%p1332_p10), %s1192_s18, 3 }
  0x50   : > { %s262_s1 = scalar_lea.sflag (!%p1332_p10), [#allocation3], %s1192_s18  ;;  %s265_s26 = scalar_lea.vmem (!%p1332_p10), [#allocation2], %s1195_s20 }
  0x54   : > { %999 = dma.done.wait (%p1333_p4), %s262_s1, 128  }
  0x55   : > { %1001 = vsyncadd (%p1333_p4), %s262_s1, 4294967168  ;;  %p1334_p8 = scmp.eq.s32.totalorder %s1095_s25, 0 }
  0x57   : > { %1003 = dma.done.wait (%p1334_p8), [#allocation6], 4096   ;;  %p1335_p3 = pmov %p1334_p8 }
  0x58   : > { %v1035_v0 = vmov 0.0   ;;  %vm1036_vm0 = vmmov 0   ;;  %v323_v1 = vld [vmem:[#allocation5 + $0x78] sm:$0xff]  ;;  %v322_v2 = vld [vmem:[#allocation5 + $0x70] sm:$0xff]  ;;  %v321_v3 = vld [vmem:[#allocation5 + $0x68] sm:$0xff]  ;;  %s299_s13 = scalar_lea.vmem [#allocation8], %s1195_s20 }
  0x59   : > { %1005 = vsyncadd (%p1335_p3), [#allocation6], 4294963200  ;;  %704 = vmatprep.subr.mxu0 %v1035_v0  ;;  %736 = vmatprep.mubr.msk.f32.mxu0 %vm1036_vm0, %v1035_v0  ;;  %v320_v4 = vld [vmem:[#allocation5 + $0x60] sm:$0xff]  ;;  %v417_v5 = vld [vmem:[#allocation7 + $0x78] sm:$0xff]  ;;  %s666_s15 = sshll.u32 %s1095_s25, 7  ;;  %s515_s16 = sshll.u32 %s299_s13, 4  ;;  %s516_s16 = int_to_ptr.vmem [resolvable:$true] %s515_s16 }
  0x5a   : > { %739 = vmatprep.subr.mxu1 %v1035_v0  ;;  %771 = vmatprep.mubr.msk.f32.mxu1 %vm1036_vm0, %v1035_v0  ;;  %v319_v6 = vld [vmem:[#allocation5 + $0x58] sm:$0xff]  ;;  %v416_v7 = vld [vmem:[#allocation7 + $0x70] sm:$0xff]  ;;  %v415_v8 = vld [vmem:[#allocation7 + $0x68] sm:$0xff]  ;;  %s513_s11 = scalar_lea.hbm %s1317_s5, %s666_s15  ;;  %s497_s9 = scalar_lea.sflag [#allocation4], %s1192_s18 }
  0x5b   : > { %705 = vmatpush3.msra.mxu0 %v323_v1  ;;  %740 = vmatpush3.msra.mxu1 %v417_v5  ;;  %v318_v9 = vld [vmem:[#allocation5 + $0x50] sm:$0xff]  ;;  %v414_v10 = vld [vmem:[#allocation7 + $0x60] sm:$0xff]  ;;  %v317_v11 = vld [vmem:[#allocation5 + $0x48] sm:$0xff]  ;;  %s930_s12 = scalar_lea.vmem %s516_s16, 128  ;;  %p1336_p0 = scmp.ne.s32.totalorder %s1330_s30, 0 }
  0x5c   : > { %706 = vmatprep.subr.mxu0 %v1035_v0  ;;  %741 = vmatprep.subr.mxu1 %v1035_v0  ;;  %v413_v12 = vld [vmem:[#allocation7 + $0x58] sm:$0xff]  ;;  %v316_v13 = vld [vmem:[#allocation5 + $0x40] sm:$0xff]  ;;  %v412_v14 = vld [vmem:[#allocation7 + $0x50] sm:$0xff]  ;;  %p931_p11 = scmp.ne.s32.totalorder %s516_s16, %s930_s12  ;;  %s1037_s8 = smov [#allocation8]  }
  0x5d   : > { %707 = vmatpush3.msra.mxu0 %v322_v2  ;;  %742 = vmatpush3.msra.mxu1 %v416_v7  ;;  %v315_v15 = vld [vmem:[#allocation5 + $0x38] sm:$0xff]  ;;  %v411_v16 = vld [vmem:[#allocation7 + $0x48] sm:$0xff]  ;;  %v314_v17 = vld [vmem:[#allocation5 + $0x30] sm:$0xff]  ;;  %s934_s14 = sshll.u32 %s1037_s8, 4  ;;  %s935_s14 = int_to_ptr.vmem [resolvable:$false] %s934_s14 }
  0x5e   : > { %708 = vmatprep.subr.mxu0 %v1035_v0  ;;  %743 = vmatprep.subr.mxu1 %v1035_v0  ;;  %v410_v18 = vld [vmem:[#allocation7 + $0x40] sm:$0xff]  ;;  %v313_v19 = vld [vmem:[#allocation5 + $0x28] sm:$0xff]  ;;  %v409_v20 = vld [vmem:[#allocation7 + $0x38] sm:$0xff]  ;;  %p932_p1 = pnand %p931_p11, %p1336_p0  ;;  %s936_s1 = scalar_lea.vmem %s935_s14, 256 }
  0x5f   : > { %709 = vmatpush3.msra.mxu0 %v321_v3  ;;  %744 = vmatpush3.msra.mxu1 %v415_v8  ;;  %v312_v21 = vld [vmem:[#allocation5 + $0x20] sm:$0xff]  ;;  %v408_v22 = vld [vmem:[#allocation7 + $0x30] sm:$0xff]  ;;  %v311_v23 = vld [vmem:[#allocation5 + $0x18] sm:$0xff]  ;;  %p937_p6 = scmp.lt.s32.totalorder %s516_s16, %s935_s14  ;;  %p938_p12 = scmp.lt.s32.totalorder %s936_s1, %s930_s12 }
  0x60   : > { %710 = vmatprep.subr.mxu0 %v1035_v0  ;;  %745 = vmatprep.subr.mxu1 %v1035_v0  ;;  %v407_v24 = vld [vmem:[#allocation7 + $0x28] sm:$0xff]  ;;  %v310_v25 = vld [vmem:[#allocation5 + $0x10] sm:$0xff]  ;;  %v406_v26 = vld [vmem:[#allocation7 + $0x20] sm:$0xff]  ;;  %p933_p2 = pneg %p932_p1 }
  0x61   : > { %711 = vmatpush3.msra.mxu0 %v320_v4  ;;  %746 = vmatpush3.msra.mxu1 %v414_v10  ;;  %v309_v27 = vld [vmem:[#allocation5 + $0x8] sm:$0xff]  ;;  %v405_v28 = vld [vmem:[#allocation7 + $0x18] sm:$0xff]  ;;  %v308_v29 = vld [vmem:[#allocation5] sm:$0xff]  ;;  %p939_p7 = por %p938_p12, %p937_p6 }
  0x62   : > { %712 = vmatprep.subr.mxu0 %v1035_v0  ;;  %747 = vmatprep.subr.mxu1 %v1035_v0  ;;  %v307_v30 = vld [vmem:[%s265_s26] sm:$0xff]  ;;  %v403_v32 = vld [vmem:[#allocation7 + $0x8] sm:$0xff]  ;;  %v402_v33 = vld [vmem:[#allocation7] sm:$0xff] }
  0x63   : > { %713 = vmatpush3.msra.mxu0 %v319_v6  ;;  %748 = vmatpush3.msra.mxu1 %v413_v12  ;;  %v404_v31 = vld [vmem:[#allocation7 + $0x10] sm:$0xff]  ;;  %p940_p9 = pnand %p939_p7, %p933_p2 }
  0x64   : > { %714 = vmatprep.subr.mxu0 %v1035_v0  ;;  %749 = vmatprep.subr.mxu1 %v1035_v0  ;;  %v662_v34 = vld [vmem:[%s1314_s2] ss:$0 sm:$0xff] }
  0x65   : > { %715 = vmatpush3.msra.mxu0 %v318_v9  ;;  %750 = vmatpush3.msra.mxu1 %v412_v14 }
  0x66   : > { %716 = vmatprep.subr.mxu0 %v1035_v0  ;;  %751 = vmatprep.subr.mxu1 %v1035_v0 }
  0x67   : > { %717 = vmatpush3.msra.mxu0 %v317_v11  ;;  %752 = vmatpush3.msra.mxu1 %v411_v16 }
  0x68   : > { %718 = vmatprep.subr.mxu0 %v1035_v0  ;;  %753 = vmatprep.subr.mxu1 %v1035_v0 }
  0x69   : > { %719 = vmatpush3.msra.mxu0 %v316_v13  ;;  %754 = vmatpush3.msra.mxu1 %v410_v18 }
  0x6a   : > { %720 = vmatprep.subr.mxu0 %v1035_v0  ;;  %755 = vmatprep.subr.mxu1 %v1035_v0 }
  0x6b   : > { %721 = vmatpush3.msra.mxu0 %v315_v15  ;;  %756 = vmatpush3.msra.mxu1 %v409_v20 }
  0x6c   : > { %722 = vmatprep.subr.mxu0 %v1035_v0  ;;  %757 = vmatprep.subr.mxu1 %v1035_v0 }
  0x6d   : > { %723 = vmatpush3.msra.mxu0 %v314_v17  ;;  %758 = vmatpush3.msra.mxu1 %v408_v22 }
  0x6e   : > { %724 = vmatprep.subr.mxu0 %v1035_v0  ;;  %759 = vmatprep.subr.mxu1 %v1035_v0 }
  0x6f   : > { %725 = vmatpush3.msra.mxu0 %v313_v19  ;;  %760 = vmatpush3.msra.mxu1 %v407_v24 }
  0x70   : > { %726 = vmatprep.subr.mxu0 %v1035_v0  ;;  %761 = vmatprep.subr.mxu1 %v1035_v0 }
  0x71   : > { %727 = vmatpush3.msra.mxu0 %v312_v21  ;;  %762 = vmatpush3.msra.mxu1 %v406_v26 }
  0x72   : > { %728 = vmatprep.subr.mxu0 %v1035_v0  ;;  %763 = vmatprep.subr.mxu1 %v1035_v0 }
  0x73   : > { %729 = vmatpush3.msra.mxu0 %v311_v23  ;;  %764 = vmatpush3.msra.mxu1 %v405_v28 }
  0x74   : > { %730 = vmatprep.subr.mxu0 %v1035_v0  ;;  %765 = vmatprep.subr.mxu1 %v1035_v0 }
  0x75   : > { %731 = vmatpush3.msra.mxu0 %v310_v25  ;;  %766 = vmatpush3.msra.mxu1 %v404_v31 }
  0x76   : > { %732 = vmatprep.subr.mxu0 %v1035_v0  ;;  %767 = vmatprep.subr.mxu1 %v1035_v0 }
  0x77   : > { %733 = vmatpush3.msra.mxu0 %v309_v27  ;;  %768 = vmatpush3.msra.mxu1 %v403_v32 }
  0x78   : > { %734 = vmatprep.subr.mxu0 %v1035_v0  ;;  %769 = vmatprep.subr.mxu1 %v1035_v0 }
  0x79   : > { %735 = vmatpush3.msra.mxu0 %v308_v29  ;;  %770 = vmatpush3.msra.mxu1 %v402_v33 }
  0x7a   : > { %737 = vmatmul.mubr.f32.vlgmr.msra.gmra.mxu0 %v307_v30 }
 0x13a   : > { %v397_v35 = vpop.f32.mrf.mxu0 }
 0x13b   : > { %v398_v36 = vadd.f32 %v662_v34, %v397_v35 }
 0x13c   : > { %v738_v37 = vpop.f32.mrf.mxu0 }
 0x13d   : > { %401 = vst [vmem:[%s299_s13] sm:$0xff] %v398_v36  ;;  %772 = vmatmul.mubr.f32.vlgmr.msra.gmra.mxu1 %v398_v36 }
 0x13e   : > { %943 = shalt.err (!%p940_p9)
}
 0x13f   : > { %s944_s26 = scalar_lea.hbm %s513_s11, 128  ;;  %s948_s13 = scalar_lea.hbm %s1317_s5, 256 }
 0x140   : > { %p945_p13 = scmp.ne.s32.totalorder %s513_s11, %s944_s26  ;;  %p949_p4 = scmp.lt.s32.totalorder %s513_s11, %s1317_s5 }
 0x141   : > { %p950_p8 = scmp.lt.s32.totalorder %s948_s13, %s944_s26 }
 0x142   : > { %p946_p5 = pnand %p945_p13, %p1336_p0 }
 0x143   : > { %p951_p3 = por %p950_p8, %p949_p4 }
 0x144   : > { %p947_p10 = pneg %p946_p5 }
 0x146   : > { %p952_p11 = pnand %p951_p3, %p947_p10 }
 0x148   : > { %955 = shalt.err (!%p952_p11)
}
 0x149   : > { %784 = dma.vmem_to_hbm [thread:$0]  (%p1336_p0), %s516_s16, 128, %s513_s11, %s497_s9   ;;  %v663_v38 = vld [vmem:[%s1316_s4] ss:$0 sm:$0xff] }
 0x14a   : > { %s306_s14 = scalar_lea.vmem [#allocation9], %s1195_s20  ;;  %s1275_s29 = scalar_lea.hbm %s1318_s6, %s666_s15 }
 0x14b   : > { %s528_s1 = sshll.u32 %s306_s14, 4  ;;  %s502_s13 = scalar_lea.sflag [#allocation10], %s1192_s18  ;;  %s529_s1 = int_to_ptr.vmem [resolvable:$true] %s528_s1 }
 0x14c   : > { %s956_s17 = scalar_lea.vmem %s529_s1, 128  ;;  %s1038_s16 = smov [#allocation9]  }
 0x14d   : > { %p957_p1 = scmp.ne.s32.totalorder %s529_s1, %s956_s17  ;;  %s960_s20 = sshll.u32 %s1038_s16, 4  ;;  %s961_s20 = int_to_ptr.vmem [resolvable:$false] %s960_s20 }
 0x14e   : > { %s962_s11 = scalar_lea.vmem %s961_s20, 256  ;;  %p963_p12 = scmp.lt.s32.totalorder %s529_s1, %s961_s20 }
 0x14f   : > { %p958_p2 = pnand %p957_p1, %p1336_p0  ;;  %p964_p7 = scmp.lt.s32.totalorder %s962_s11, %s956_s17 }
 0x151   : > { %p959_p6 = pneg %p958_p2  ;;  %p965_p9 = por %p964_p7, %p963_p12 }
 0x153   : > { %p966_p13 = pnand %p965_p9, %p959_p6 }
 0x1fd   : > { %v491_v39 = vpop.f32.mrf.mxu1 }
 0x1fe   : > { %v492_v40 = vadd.f32 %v663_v38, %v491_v39 }
 0x1ff   : > { %v773_v41 = vpop.f32.mrf.mxu1 }
 0x200   : > { %495 = vst [vmem:[%s306_s14] sm:$0xff] %v492_v40 }
 0x201   : > { %969 = shalt.err (!%p966_p13)
}
 0x202   : > { %s970_s25 = scalar_lea.hbm %s1275_s29, 128  ;;  %s974_s9 = scalar_lea.hbm %s1318_s6, 256 }
 0x203   : > { %p971_p5 = scmp.ne.s32.totalorder %s1275_s29, %s970_s25  ;;  %p975_p8 = scmp.lt.s32.totalorder %s1275_s29, %s1318_s6 }
 0x204   : > { %p976_p3 = scmp.lt.s32.totalorder %s974_s9, %s970_s25 }
 0x205   : > { %p972_p10 = pnand %p971_p5, %p1336_p0 }
 0x206   : > { %p977_p11 = por %p976_p3, %p975_p8 }
 0x207   : > { %p973_p4 = pneg %p972_p10 }
 0x209   : > { %p978_p1 = pnand %p977_p11, %p973_p4 }
 0x20b   : > { %981 = shalt.err (!%p978_p1)
}
 0x20c   : > { %785 = dma.vmem_to_hbm [thread:$0]  (%p1336_p0), %s529_s1, 128, %s1275_s29, %s502_s13  }
 0x20d PF: > { %s540_s8 = sand.u32 1, %s1016_s21   ;;  %p1337_p2 = scmp.ne.s32.totalorder %s1325_s28, 0 }
 0x20e   : > { %p1338_p6 = scmp.ge.s32.totalorder %s1028_s24, 2  ;;  %s541_s14 = scalar_lea.sflag [#allocation4], %s540_s8 }
 0x210   : > { %p800_p12 = pnand %p1338_p6, %p1337_p2 }
 0x212   : > { %p801_p7 = pneg %p800_p12 }
 0x214   : > { %1007 = dma.done.wait (%p801_p7), %s541_s14, 128  }
 0x215   : > { %1009 = vsyncadd (%p801_p7), %s541_s14, 4294967168  ;;  %s550_s26 = scalar_lea.sflag [#allocation10], %s540_s8 }
 0x216   : > { %1011 = dma.done.wait (%p801_p7), %s550_s26, 128  }
 0x217   : > { %1013 = vsyncadd (%p801_p7), %s550_s26, 4294967168  ;;  %p24_p0 = scmp.ge.s32.totalorder %s1146_s19, 4   ;;  %s1339_s21 = smov %s1020_s22 }
 0x218   : > { %s1340_s22 = smov %s1024_s23  ;;  %s1341_s23 = smov %s1162_s7 }
 0x219   : > { %s1342_s24 = smov %s1146_s19  ;;  %26 = sbr.rel (!%p24_p0) target bundleno = 10 (0xa), region = 110 }
 0x21e   :  { %555 = vsyncpa [#allocation3], 1 }
 0x21f   :  { %557 = vsyncpa [#allocation3 + $0x1], 1 }
 0x220   :  { %558 = vsyncpa [#allocation6], 1 }
 0x221   :  { %559 = vsyncpa [#allocation4], 1 }
 0x222   :  { %561 = vsyncpa [#allocation4 + $0x1], 1 }
 0x223   :  { %562 = vsyncpa [#allocation10], 1 }
 0x224   :  { %564 = vsyncpa [#allocation10 + $0x1], 1 }

</bundles_post_ra>
